<compile_context>
chip_gen: v7x
topology: tpu7x:2x2x1
jax: 0.10.0
libtpu: 0.0.40
codegen_flags: <defaults>
</compile_context>

<pallas_src>
import jax
import jax.numpy as jnp
from jax.experimental import pallas as pl
from jax.experimental.pallas import tpu as pltpu


def _net_kernel(a_ref, f_ref, p1_ref, ph_ref, out_ref):
    a = a_ref[...]                                    # [N, N]

    # Layer-1 slab: rows 0..1 = W1^T ([2, 16]), row 2 = b1 ([1, 16]).
    w1 = p1_ref[0:2, :]
    b1 = p1_ref[2:3, :]
    # Head slab: rows 0..15 = Whead^T ([16, 4] = mu||sigma), row 16 = bias.
    wh = ph_ref[0:16, :]
    bh = ph_ref[16:17, :]

    # ---- GCN layer 1: aggregate then linear + tanh -------------------------
    agg1 = jnp.dot(a, f_ref[...],
                   preferred_element_type=jnp.float32)            # [N, F_in]
    x = jnp.tanh(jnp.dot(agg1, w1,
                         preferred_element_type=jnp.float32) + b1)  # [N, 16]

    # ---- GCN layer 2: shared aggregation, fused mu/sigma head --------------
    agg2 = jnp.dot(a, x, preferred_element_type=jnp.float32)       # [N, 16]
    out_ref[...] = jnp.tanh(jnp.dot(agg2, wh,
                                    preferred_element_type=jnp.float32)
                            + bh)                                   # [N, 4]


def net_forward(adj, features, params):
    """Fused Pallas forward pass. adj: [N, N], features: [N, 2]."""
    n = features.shape[0]

    # Host/trace-time parameter packing (free; keeps in-kernel layout clean).
    w1_t = params["w1"].T                                        # [2, 16]
    slab1 = jnp.concatenate([w1_t, params["b1"][None, :]], 0)    # [3, 16]
    wh_t = jnp.concatenate([params["wmu"], params["ws"]], 0).T   # [16, 4]
    bh = jnp.concatenate([params["bmu"], params["bs"]])[None, :]  # [1, 4]
    slabh = jnp.concatenate([wh_t, bh], 0)                       # [17, 4]

    vmem_spec = pl.BlockSpec(memory_space=pltpu.MemorySpace.VMEM)
    out = pl.pallas_call(
        _net_kernel,
        out_shape=jax.ShapeDtypeStruct((n, 4), jnp.float32),
        in_specs=[vmem_spec] * 4,
        out_specs=vmem_spec,
    )(adj, features, slab1, slabh)

    mu = out[:, 0:2]
    sigma = out[:, 2:4]
    return mu, sigma


def init_params(key):
    """Deterministic init with nn.Linear shapes: W[out, in], b[out]."""
    ks = jax.random.split(key, 6)

    def lin(kw, kb, fan_in, fan_out):
        bound = 1.0 / jnp.sqrt(fan_in)
        w = jax.random.uniform(kw, (fan_out, fan_in), jnp.float32, -bound, bound)
        b = jax.random.uniform(kb, (fan_out,), jnp.float32, -bound, bound)
        return w, b

    w1, b1 = lin(ks[0], ks[1], 2, 16)      # gcn1:        2 -> 16
    wmu, bmu = lin(ks[2], ks[3], 16, 2)    # gcn2_mu:    16 ->  2
    ws, bs = lin(ks[4], ks[5], 16, 2)      # gcn2_sigma: 16 ->  2
    return {"w1": w1, "b1": b1, "wmu": wmu, "bmu": bmu, "ws": ws, "bs": bs}


def _reference(adj, features, p):
    """Pure-JAX reference for sanity checking."""
    x = jnp.tanh(adj @ features @ p["w1"].T + p["b1"])
    mu = jnp.tanh(adj @ x @ p["wmu"].T + p["bmu"])
    sigma = jnp.tanh(adj @ x @ p["ws"].T + p["bs"])
    return mu, sigma


if __name__ == "__main__":
    key = jax.random.PRNGKey(0)
    k_param, k_feat = jax.random.split(key)

    N = 8  # number of graph nodes
    params = init_params(k_param)

    # Deterministic small graph: ring with self-loops (A[i, j] = 1 iff j->i).
    idx = jnp.arange(N)
    adj = (jnp.zeros((N, N), jnp.float32)
           .at[idx, idx].set(1.0)                 # self loops
           .at[idx, (idx + 1) % N].set(1.0)       # edge (i+1) -> i
           .at[idx, (idx - 1) % N].set(1.0))      # edge (i-1) -> i

    features = jax.random.normal(k_feat, (N, 2), jnp.float32)

    mu, sigma = net_forward(adj, features, params)
    jax.block_until_ready((mu, sigma))

    mu_ref, sigma_ref = _reference(adj, features, params)
    assert mu.shape == (N, 2) and sigma.shape == (N, 2)
    assert jnp.allclose(mu, mu_ref, atol=1e-5)
    assert jnp.allclose(sigma, sigma_ref, atol=1e-5)

    print("KERNEL_OK")
</pallas_src>

<mosaic_0001>
module attributes {stable_mosaic.version = 11 : i64} {
  func.func @_net_kernel(%arg0: memref<8x8xf32, #tpu.memory_space<vmem>>, %arg1: memref<8x2xf32, #tpu.memory_space<vmem>>, %arg2: memref<3x16xf32, #tpu.memory_space<vmem>>, %arg3: memref<17x4xf32, #tpu.memory_space<vmem>>, %arg4: memref<8x4xf32, #tpu.memory_space<vmem>>) attributes {dimension_semantics = [], scalar_prefetch = 0 : i64, scratch_operands = 0 : i64, tpu.core_type = #tpu.core_type<tc>} {
    %c0 = arith.constant 0 : index
    %c0_0 = arith.constant 0 : index
    %0 = vector.load %arg0[%c0, %c0_0] : memref<8x8xf32, #tpu.memory_space<vmem>>, vector<8x8xf32>
    %c0_1 = arith.constant 0 : index
    %c0_2 = arith.constant 0 : index
    %1 = vector.load %arg2[%c0_1, %c0_2] : memref<3x16xf32, #tpu.memory_space<vmem>>, vector<2x16xf32>
    %c2 = arith.constant 2 : index
    %c0_3 = arith.constant 0 : index
    %2 = vector.load %arg2[%c2, %c0_3] : memref<3x16xf32, #tpu.memory_space<vmem>>, vector<1x16xf32>
    %c0_4 = arith.constant 0 : index
    %c0_5 = arith.constant 0 : index
    %3 = vector.load %arg3[%c0_4, %c0_5] : memref<17x4xf32, #tpu.memory_space<vmem>>, vector<16x4xf32>
    %c16 = arith.constant 16 : index
    %c0_6 = arith.constant 0 : index
    %4 = vector.load %arg3[%c16, %c0_6] : memref<17x4xf32, #tpu.memory_space<vmem>>, vector<1x4xf32>
    %c0_7 = arith.constant 0 : index
    %c0_8 = arith.constant 0 : index
    %5 = vector.load %arg1[%c0_7, %c0_8] : memref<8x2xf32, #tpu.memory_space<vmem>>, vector<8x2xf32>
    %cst = arith.constant dense<0.000000e+00> : vector<8x2xf32>
    %6 = tpu.matmul %0, %5, %cst {dimension_numbers = #tpu.dot_dimension_numbers<[1], [0], [0], [1], [0, 0, 1, 1], [], []>} : vector<8x8xf32>, vector<8x2xf32>, vector<8x2xf32> -> vector<8x2xf32>
    %cst_9 = arith.constant dense<0.000000e+00> : vector<8x16xf32>
    %7 = tpu.matmul %6, %1, %cst_9 {dimension_numbers = #tpu.dot_dimension_numbers<[1], [0], [0], [1], [0, 0, 1, 1], [], []>} : vector<8x2xf32>, vector<2x16xf32>, vector<8x16xf32> -> vector<8x16xf32>
    %8 = vector.broadcast %2 : vector<1x16xf32> to vector<8x16xf32>
    %9 = arith.addf %7, %8 : vector<8x16xf32>
    %10 = math.tanh %9 : vector<8x16xf32>
    %cst_10 = arith.constant dense<0.000000e+00> : vector<8x16xf32>
    %11 = tpu.matmul %0, %10, %cst_10 {dimension_numbers = #tpu.dot_dimension_numbers<[1], [0], [0], [1], [0, 0, 1, 1], [], []>} : vector<8x8xf32>, vector<8x16xf32>, vector<8x16xf32> -> vector<8x16xf32>
    %cst_11 = arith.constant dense<0.000000e+00> : vector<8x4xf32>
    %12 = tpu.matmul %11, %3, %cst_11 {dimension_numbers = #tpu.dot_dimension_numbers<[1], [0], [0], [1], [0, 0, 1, 1], [], []>} : vector<8x16xf32>, vector<16x4xf32>, vector<8x4xf32> -> vector<8x4xf32>
    %13 = vector.broadcast %4 : vector<1x4xf32> to vector<8x4xf32>
    %14 = arith.addf %12, %13 : vector<8x4xf32>
    %15 = math.tanh %14 : vector<8x4xf32>
    %c0_12 = arith.constant 0 : index
    %c0_13 = arith.constant 0 : index
    %16 = vector.load %arg4[%c0_12, %c0_13] : memref<8x4xf32, #tpu.memory_space<vmem>>, vector<8x4xf32>
    tpu.vector_store %arg4[%c0_12, %c0_13], %15 {strides = array<i32>} : memref<8x4xf32, #tpu.memory_space<vmem>>, vector<8x4xf32>,
    return
  }
}

</mosaic_0001>

<bundles_post_ra>
// kernel: tpu_custom_call.1
= control target key start
LH: loop header
LB: loop body
LE: loop exit
PB: predicated region body
PF: predicated region fallthrough
CT: control target
= control target key end

     0   :  { %vm24_vm0 = vcmask 64512   ;;  %v384_v0 = vmov 0.0   ;;  %vm385_vm1 = vmmov 0   ;;  %vm106_vm2 = vcmask 1041408   ;;  %s442_s1 = inlined_call_operand.vmem [shape: f32[8,2], index: 1, kind: input, shape index: {}]   ;;  %s443_s0 = inlined_call_operand.vmem [shape: f32[8,8], index: 0, kind: input, shape index: {}]   ;;  %s444_s2 = inlined_call_operand.vmem [shape: f32[3,16], index: 2, kind: input, shape index: {}]   ;;  %s445_s3 = inlined_call_operand.vmem [shape: f32[17,4], index: 3, kind: input, shape index: {}]   ;;  %s446_s4 = inlined_call_operand.vmem [shape: f32[8,4], index: 4, kind: output, shape index: {}]  }
   0x1   :  { %352 = vmatprep.subr.mxu0 %v384_v0  ;;  %v23_v1 = vld [vmem:[%s442_s1] sm:$0xff]  ;;  %354 = vmatprep.mubr.msk.f32.mxu0 %vm385_vm1, %v384_v0  ;;  %vm102_vm3 = vcmask 15360   ;;  %v386_v6 = vmov 0.0|0.0   ;;  %v21_v8 = vld [vmem:[%s445_s3 + $0x8] sm:$0xff]  ;;  %vm255_vm4 = vcmask 130048   ;;  %vm330_vm5 = vcmask 31744  }
   0x2   :  { %v17_v2 = vld [vmem:[%s443_s0] sm:$0xff]  ;;  %353 = vmatpush3.msra.mxu0 %v23_v1  ;;  %357 = vmatprep.subr.mxu1 %v384_v0  ;;  %v341_v17 = vld [vmem:[%s445_s3 + $0x10] ss:$0 sm:$0xff] }
   0x3   :  { %355 = vmatmul.mubr.msk.f32.vlgmr.msra.gmra.mrb[0].mxu0 %vm24_vm0, %v17_v2  ;;  %359 = vmatprep.mubr.msk.f32.mxu1 %vm385_vm1, %v384_v0  ;;  %v18_v3 = vld [vmem:[%s444_s2] sm:$0x3]  ;;  %v337_v10 = vld [vmem:[%s444_s2 + $0x2] ss:$0 sm:$0xff] }
   0x4   :  { %362 = vmatprep.subr.mxu0 %v384_v0  ;;  %364 = vmatprep.mubr.msk.f32.mxu0 %vm385_vm1, %v384_v0  ;;  %v20_v7 = vld [vmem:[%s445_s3] sm:$0xff] }
   0x5   :  { %358 = vmatpush3.msk.msra.mxu1 %vm106_vm2, %v18_v3  ;;  %v375_v9 = vpack.c.bf16 %v21_v8, %v20_v7 }
   0x6   :  { %374 = vmatprep.subr.bf16.mxu1 %v386_v6 }
  0xd6   :  { %v94_v4 = vpop.f32.mrb[0].mxu0 }
  0xd7   :  { %v356_v5 = vpop.f32.mrb[1].mxu0  ;;  %360 = vmatmul.mubr.msk.f32.vlgmr.msra.gmra.mrb[0].mxu1 %vm102_vm3, %v94_v4 }
  0xd8   :  { %371 = vmatprep.mubr.msk.f32.mxu1 %vm385_vm1, %v384_v0  ;;  %376 = vmatpush3.bf16.msra.mxu1 %v375_v9 }
 0x1aa   :  { %v176_v11 = vpop.f32.mrb[0].mxu1 }
 0x1ab   :  { %v177_v12 = vadd.f32 %v337_v10, %v176_v11  ;;  %v361_v13 = vpop.f32.mrb[1].mxu1 }
 0x1ad   :  { %380 = vtanh.f32 %v177_v12 }
 0x1b7   :  { %v381_v14 = vpop.eup %380 }
 0x1b8   :  { %363 = vmatpush3.msra.mxu0 %v381_v14 }
 0x1b9   :  { %365 = vmatmul.mubr.msk.f32.vlgmr.msra.gmra.mrb[2].mxu0 %vm24_vm0, %v17_v2 }
 0x28c   :  { %v247_v15 = vpop.f32.mrb[2].mxu0 }
 0x28d   :  { %v366_v16 = vpop.f32.mrb[3].mxu0  ;;  %372 = vmatmul.mubr.msk.f32.vlgmr.msra.gmra.mrb[2].mxu1 %vm255_vm4, %v247_v15 }
 0x360   :  { %v325_v18 = vpop.f32.mrb[2].mxu1 }
 0x361   :  { %v326_v19 = vadd.f32 %v341_v17, %v325_v18  ;;  %v373_v20 = vpop.f32.mrb[3].mxu1 }
 0x363   :  { %382 = vtanh.f32 %v326_v19 }
 0x36d   :  { %v383_v21 = vpop.eup %382 }
 0x36e   :  { %331 = vst.msk [vmem:[%s446_s4] sm:$0xff] %vm330_vm5, %v383_v21 }

</bundles_post_ra>
